<compile_context>
chip_gen: v5e
topology: v5e:2x2
jax: 0.10.0
libtpu: 0.0.40
codegen_flags: <defaults>
</compile_context>

<pallas_src>
import functools

import jax
import jax.numpy as jnp
from jax.experimental import pallas as pl
from jax.experimental.pallas import tpu as pltpu

BN_EPS = 1e-5
LANE = 128
SUBLANE = 8


# ---------------------------------------------------------------------------
# helpers
# ---------------------------------------------------------------------------
def _round_up(n, m):
    return ((n + m - 1) // m) * m


# ---------------------------------------------------------------------------
# fused Pallas kernel
# ---------------------------------------------------------------------------
def _make_fused_kernel(num_hidden):
    """Fused MLP kernel over one (block_b, D) batch tile.

    Refs:
      x_ref : (block_b, D)    bf16   streamed batch tile (concat already padded)
      w_ref : (L+1, D, D)     bf16   BN-folded weights, VMEM-resident
      b_ref : (L+1, 1, D)     f32    BN-folded biases,  VMEM-resident
      o_ref : (block_b, D)    f32    lane-dense padded output tile
    """

    def kernel(x_ref, w_ref, b_ref, o_ref):
        h = x_ref[...]                                           # bf16
        for i in range(num_hidden):
            h32 = (jnp.dot(h, w_ref[i], preferred_element_type=jnp.float32)
                   + b_ref[i])                                   # f32 accumulate
            h32 = jnp.maximum(h32, 0.0)                          # ReLU in f32
            h = h32.astype(jnp.bfloat16)                         # downcast at dot only
        o_ref[...] = (jnp.dot(h, w_ref[num_hidden],
                              preferred_element_type=jnp.float32)
                      + b_ref[num_hidden]).astype(o_ref.dtype)

    return kernel


# ---------------------------------------------------------------------------
# wrapper: one pallas_call over a batch grid
# ---------------------------------------------------------------------------
@functools.partial(jax.jit, static_argnames=("num_classes", "block_b"))
def meta_learner_forward(prepped, logits_features, image_features, *,
                         num_classes, block_b=128):
    w_all = prepped["w"]            # (L+1, D, D) bf16
    b_all = prepped["b"]            # (L+1, 1, D) f32
    n_layers, D, _ = w_all.shape
    num_hidden = n_layers - 1

    B = logits_features.shape[0]
    x = jnp.concatenate([logits_features, image_features], axis=1)

    # Pad features to D lanes and batch to a multiple of the batch block.
    bb = min(block_b, _round_up(B, SUBLANE))
    b_pad = _round_up(B, bb)
    x = jnp.pad(x, ((0, b_pad - B), (0, D - x.shape[1]))).astype(jnp.bfloat16)

    grid = (b_pad // bb,)
    flops = 2 * b_pad * D * D * n_layers
    bytes_accessed = (w_all.size * 2 + b_all.size * 4
                      + x.size * 2 + b_pad * D * 4)

    out_pad = pl.pallas_call(
        _make_fused_kernel(num_hidden),
        out_shape=jax.ShapeDtypeStruct((b_pad, D), jnp.float32),
        grid=grid,
        in_specs=[
            pl.BlockSpec((bb, D), lambda i: (i, 0)),             # streamed x tile
            pl.BlockSpec((n_layers, D, D), lambda i: (0, 0, 0)),  # resident weights
            pl.BlockSpec((n_layers, 1, D), lambda i: (0, 0, 0)),  # resident biases
        ],
        out_specs=pl.BlockSpec((bb, D), lambda i: (i, 0)),
        compiler_params=pltpu.CompilerParams(
            dimension_semantics=("parallel",)),
        cost_estimate=pl.CostEstimate(flops=flops, transcendentals=0,
                                      bytes_accessed=bytes_accessed),
    )(x, w_all, b_all)

    # TODO(synk): downstream consumers that accept the 128-lane padded output
    # can skip this slice and avoid a small extra HBM round trip.
    return out_pad[:B, :num_classes]


# ---------------------------------------------------------------------------
# parameter construction (PyTorch-like) + kernel-friendly preparation
# ---------------------------------------------------------------------------
def init_meta_learner(key, logits_dim, image_features_dim, num_classes,
                      hidden_dims):
    """Deterministic params mirroring the PyTorch module's shapes.

    Linear weights are stored pre-transposed as (in_features, out_features).
    """
    combined_dim = logits_dim + image_features_dim
    params = {"hidden": [], "head": None}
    in_dim = combined_dim
    for h in hidden_dims:
        key, kw, kb = jax.random.split(key, 3)
        bound = 1.0 / jnp.sqrt(in_dim)
        params["hidden"].append({
            "w": jax.random.uniform(kw, (in_dim, h), jnp.float32, -bound, bound),
            "b": jax.random.uniform(kb, (h,), jnp.float32, -bound, bound),
            "gamma": jnp.ones((h,), jnp.float32),      # BN affine init
            "beta": jnp.zeros((h,), jnp.float32),
            "mean": jnp.zeros((h,), jnp.float32),      # running stats init
            "var": jnp.ones((h,), jnp.float32),
        })
        in_dim = h
    key, kw, kb = jax.random.split(key, 3)
    bound = 1.0 / jnp.sqrt(in_dim)
    params["head"] = {
        "w": jax.random.uniform(kw, (in_dim, num_classes), jnp.float32, -bound, bound),
        "b": jax.random.uniform(kb, (num_classes,), jnp.float32, -bound, bound),
    }
    return params


def prepare_params(params, logits_dim, image_features_dim, num_classes):
    """Fold eval-mode BN into Linear, pad all dims to a common 128-lane width,
    stack weights/biases into single arrays (fewer, larger DMAs)."""
    hidden = params["hidden"]
    combined_dim = logits_dim + image_features_dim
    dims = [combined_dim] + [l["w"].shape[1] for l in hidden] + [num_classes]
    D = _round_up(max(dims), LANE)

    def fold(layer):
        scale = layer["gamma"] * jax.lax.rsqrt(layer["var"] + BN_EPS)
        w = layer["w"] * scale[None, :]
        b = (layer["b"] - layer["mean"]) * scale + layer["beta"]
        return w, b

    ws, bs = [], []
    for layer in hidden:
        w, b = fold(layer)
        ws.append(w)
        bs.append(b)
    ws.append(params["head"]["w"])
    bs.append(params["head"]["b"])

    def pad_w(w):
        # zero-padded input rows consume zero-padded activation lanes;
        # zero-padded output cols produce exactly-zero activations downstream.
        return jnp.pad(w, ((0, D - w.shape[0]), (0, D - w.shape[1])))

    def pad_b(b):
        return jnp.pad(b, (0, D - b.shape[0])).reshape(1, D)

    w_all = jnp.stack([pad_w(w) for w in ws]).astype(jnp.bfloat16)   # (L+1, D, D)
    b_all = jnp.stack([pad_b(b) for b in bs]).astype(jnp.float32)    # (L+1, 1, D)
    return {"w": w_all, "b": b_all}


# ---------------------------------------------------------------------------
# pure-JAX reference (eval-mode semantics) for a sanity check
# ---------------------------------------------------------------------------
def meta_learner_ref(params, logits_features, image_features):
    x = jnp.concatenate([logits_features, image_features], axis=1)
    hp = jax.lax.Precision.HIGHEST
    for layer in params["hidden"]:
        x = jnp.dot(x, layer["w"], precision=hp) + layer["b"]
        x = (x - layer["mean"]) / jnp.sqrt(layer["var"] + BN_EPS)
        x = x * layer["gamma"] + layer["beta"]
        x = jnp.maximum(x, 0.0)
    head = params["head"]
    return jnp.dot(x, head["w"], precision=hp) + head["b"]


if __name__ == "__main__":
    # Shapes consistent with the module's forward:
    # batch=8, logits_dim=10, image_features_dim=54 (combined=64),
    # hidden_dims=[64, 32], num_classes=10.
    batch = 8
    logits_dim = 10
    image_features_dim = 54
    num_classes = 10
    hidden_dims = [64, 32]

    key = jax.random.PRNGKey(0)
    key, k_logits, k_img, k_params = jax.random.split(key, 4)

    logits_features = jax.random.normal(k_logits, (batch, logits_dim), jnp.float32)
    image_features = jax.random.normal(k_img, (batch, image_features_dim), jnp.float32)

    params = init_meta_learner(k_params, logits_dim, image_features_dim,
                               num_classes, hidden_dims)
    prepped = prepare_params(params, logits_dim, image_features_dim, num_classes)

    out = meta_learner_forward(prepped, logits_features, image_features,
                               num_classes=num_classes)
    out = jax.block_until_ready(out)

    ref = meta_learner_ref(params, logits_features, image_features)
    assert out.shape == (batch, num_classes)
    # bf16 MXU operands vs a HIGHEST-precision f32 reference -> looser tolerance.
    max_err = float(jnp.max(jnp.abs(out - ref)))
    assert jnp.allclose(out, ref, atol=3e-2, rtol=3e-2), max_err

    print("KERNEL_OK")
</pallas_src>

<mosaic_0001>
module attributes {stable_mosaic.version = 11 : i64} {
  func.func @kernel(%arg0: i32, %arg1: memref<8x128xbf16, #tpu.memory_space<vmem>>, %arg2: memref<3x128x128xbf16, #tpu.memory_space<vmem>>, %arg3: memref<3x1x128xf32, #tpu.memory_space<vmem>>, %arg4: memref<8x128xf32, #tpu.memory_space<vmem>>) attributes {dimension_semantics = [#tpu.dimension_semantics<parallel>], iteration_bounds = array<i64: 1>, scalar_prefetch = 0 : i64, scratch_operands = 0 : i64, tpu.core_type = #tpu.core_type<tc>, window_params = [{transform_indices = @transform_0, window_bounds = array<i64: 8, 128>}, {pipeline_mode = #tpu.pipeline_mode<synchronous>, transform_indices = @transform_1, window_bounds = array<i64: 3, 128, 128>}, {pipeline_mode = #tpu.pipeline_mode<synchronous>, transform_indices = @transform_2, window_bounds = array<i64: 3, 1, 128>}, {transform_indices = @transform_3, window_bounds = array<i64: 8, 128>}]} {
    %c0 = arith.constant 0 : index
    %c0_0 = arith.constant 0 : index
    %0 = vector.load %arg1[%c0, %c0_0] : memref<8x128xbf16, #tpu.memory_space<vmem>>, vector<8x128xbf16>
    %c0_1 = arith.constant 0 : index
    %c0_2 = arith.constant 0 : index
    %c0_3 = arith.constant 0 : index
    %1 = vector.load %arg2[%c0_1, %c0_2, %c0_3] : memref<3x128x128xbf16, #tpu.memory_space<vmem>>, vector<1x128x128xbf16>
    %2 = vector.shape_cast %1 : vector<1x128x128xbf16> to vector<128x128xbf16>
    %cst = arith.constant dense<0.000000e+00> : vector<8x128xf32>
    %3 = tpu.matmul %0, %2, %cst {dimension_numbers = #tpu.dot_dimension_numbers<[1], [0], [0], [1], [0, 0, 1, 1], [], []>} : vector<8x128xbf16>, vector<128x128xbf16>, vector<8x128xf32> -> vector<8x128xf32>
    %c0_4 = arith.constant 0 : index
    %c0_5 = arith.constant 0 : index
    %c0_6 = arith.constant 0 : index
    %4 = vector.load %arg3[%c0_4, %c0_5, %c0_6] : memref<3x1x128xf32, #tpu.memory_space<vmem>>, vector<1x1x128xf32>
    %5 = vector.shape_cast %4 : vector<1x1x128xf32> to vector<1x128xf32>
    %6 = vector.broadcast %5 : vector<1x128xf32> to vector<8x128xf32>
    %7 = arith.addf %3, %6 : vector<8x128xf32>
    %cst_7 = arith.constant 0.000000e+00 : f32
    %8 = vector.broadcast %cst_7 : f32 to vector<8x128xf32>
    %9 = arith.maximumf %7, %8 : vector<8x128xf32>
    %10 = arith.truncf %9 : vector<8x128xf32> to vector<8x128xbf16>
    %c1 = arith.constant 1 : index
    %c0_8 = arith.constant 0 : index
    %c0_9 = arith.constant 0 : index
    %11 = vector.load %arg2[%c1, %c0_8, %c0_9] : memref<3x128x128xbf16, #tpu.memory_space<vmem>>, vector<1x128x128xbf16>
    %12 = vector.shape_cast %11 : vector<1x128x128xbf16> to vector<128x128xbf16>
    %cst_10 = arith.constant dense<0.000000e+00> : vector<8x128xf32>
    %13 = tpu.matmul %10, %12, %cst_10 {dimension_numbers = #tpu.dot_dimension_numbers<[1], [0], [0], [1], [0, 0, 1, 1], [], []>} : vector<8x128xbf16>, vector<128x128xbf16>, vector<8x128xf32> -> vector<8x128xf32>
    %c1_11 = arith.constant 1 : index
    %c0_12 = arith.constant 0 : index
    %c0_13 = arith.constant 0 : index
    %14 = vector.load %arg3[%c1_11, %c0_12, %c0_13] : memref<3x1x128xf32, #tpu.memory_space<vmem>>, vector<1x1x128xf32>
    %15 = vector.shape_cast %14 : vector<1x1x128xf32> to vector<1x128xf32>
    %16 = vector.broadcast %15 : vector<1x128xf32> to vector<8x128xf32>
    %17 = arith.addf %13, %16 : vector<8x128xf32>
    %cst_14 = arith.constant 0.000000e+00 : f32
    %18 = vector.broadcast %cst_14 : f32 to vector<8x128xf32>
    %19 = arith.maximumf %17, %18 : vector<8x128xf32>
    %20 = arith.truncf %19 : vector<8x128xf32> to vector<8x128xbf16>
    %c2 = arith.constant 2 : index
    %c0_15 = arith.constant 0 : index
    %c0_16 = arith.constant 0 : index
    %21 = vector.load %arg2[%c2, %c0_15, %c0_16] : memref<3x128x128xbf16, #tpu.memory_space<vmem>>, vector<1x128x128xbf16>
    %22 = vector.shape_cast %21 : vector<1x128x128xbf16> to vector<128x128xbf16>
    %cst_17 = arith.constant dense<0.000000e+00> : vector<8x128xf32>
    %23 = tpu.matmul %20, %22, %cst_17 {dimension_numbers = #tpu.dot_dimension_numbers<[1], [0], [0], [1], [0, 0, 1, 1], [], []>} : vector<8x128xbf16>, vector<128x128xbf16>, vector<8x128xf32> -> vector<8x128xf32>
    %c2_18 = arith.constant 2 : index
    %c0_19 = arith.constant 0 : index
    %c0_20 = arith.constant 0 : index
    %24 = vector.load %arg3[%c2_18, %c0_19, %c0_20] : memref<3x1x128xf32, #tpu.memory_space<vmem>>, vector<1x1x128xf32>
    %25 = vector.shape_cast %24 : vector<1x1x128xf32> to vector<1x128xf32>
    %26 = vector.broadcast %25 : vector<1x128xf32> to vector<8x128xf32>
    %27 = arith.addf %23, %26 : vector<8x128xf32>
    %c0_21 = arith.constant 0 : index
    %c0_22 = arith.constant 0 : index
    %28 = vector.load %arg4[%c0_21, %c0_22] : memref<8x128xf32, #tpu.memory_space<vmem>>, vector<8x128xf32>
    tpu.vector_store %arg4[%c0_21, %c0_22], %27 {strides = array<i32>} : memref<8x128xf32, #tpu.memory_space<vmem>>, vector<8x128xf32>,
    return
  }
  func.func @transform_0(%arg0: i32) -> (i32, i32) {
    %c0_i32 = arith.constant 0 : i32
    %c0_i32_0 = arith.constant 0 : i32
    return %arg0, %c0_i32 : i32, i32
  }
  func.func @transform_1(%arg0: i32) -> (i32, i32, i32) {
    %c0_i32 = arith.constant 0 : i32
    %c0_i32_0 = arith.constant 0 : i32
    %c0_i32_1 = arith.constant 0 : i32
    %c0_i32_2 = arith.constant 0 : i32
    return %c0_i32, %c0_i32_0, %c0_i32_1 : i32, i32, i32
  }
  func.func @transform_2(%arg0: i32) -> (i32, i32, i32) {
    %c0_i32 = arith.constant 0 : i32
    %c0_i32_0 = arith.constant 0 : i32
    %c0_i32_1 = arith.constant 0 : i32
    %c0_i32_2 = arith.constant 0 : i32
    return %c0_i32, %c0_i32_0, %c0_i32_1 : i32, i32, i32
  }
  func.func @transform_3(%arg0: i32) -> (i32, i32) {
    %c0_i32 = arith.constant 0 : i32
    %c0_i32_0 = arith.constant 0 : i32
    return %arg0, %c0_i32 : i32, i32
  }
}

</mosaic_0001>

<bundles_post_ra>
// kernel: meta_learner_forward.1
= control target key start
LH: loop header
LB: loop body
LE: loop exit
PB: predicated region body
PF: predicated region fallthrough
CT: control target
= control target key end

     0   :  { %8 = vsyncpa [#allocation3], 0  ;;  %s524_s0 = inlined_call_operand.vmem [shape: bf16[8,128], index: 0, kind: input, shape index: {}]   ;;  %s525_s1 = inlined_call_operand.hbm [shape: bf16[3,128,128], index: 1, kind: input, shape index: {}]   ;;  %s526_s2 = inlined_call_operand.vmem [shape: f32[3,1,128], index: 2, kind: input, shape index: {}]   ;;  %s527_s3 = inlined_call_operand.hbm [shape: f32[8,128], index: 3, kind: output, shape index: {}]  }
   0x1   :  { %9 = vsyncpa [#allocation4], 0  ;;  %s16_s14 = sshll.u32 %s525_s1, 4  ;;  %s482_s15 = smov [#allocation2]   ;;  %s17_s14 = int_to_ptr.hbm [resolvable:$true] %s16_s14 }
   0x2   :  { %s18_s16 = sshll.u32 %s482_s15, 4  ;;  %s483_s17 = smov 64   ;;  %s19_s16 = int_to_ptr.vmem [resolvable:$true] %s18_s16 }
   0x3   :  { %s484_s18 = smov 4  }
   0x4   :  { %24 = dma.hbm_to_vmem [thread:$0]  %s17_s14, 3072, %s19_s16, [#allocation3], %s483_s17, %s483_s17, %s484_s18  }
   0x5   :  { %478 = dma.done.wait [#allocation3], 3072  }
   0x6   :  { %479 = vsyncadd [#allocation3], 4294964224  ;;  %v406_v0 = vld [vmem:[#allocation2 + $0x38] sm:$0xff]  ;;  %v405_v1 = vld [vmem:[#allocation2 + $0x30] sm:$0xff]  ;;  %s485_s25 = smov [#allocation5]   ;;  %s291_s29 = sshll.u32 %s527_s3, 4  ;;  %s292_s29 = int_to_ptr.hbm [resolvable:$true] %s291_s29 }
   0x7   :  { %100 = vmatpush.bf16.msra.mxu0 %v406_v0  ;;  %v414_v2 = vld [vmem:[#allocation2 + $0x78] sm:$0xff]  ;;  %v413_v3 = vld [vmem:[#allocation2 + $0x70] sm:$0xff]  ;;  %v404_v4 = vld [vmem:[#allocation2 + $0x28] sm:$0xff]  ;;  %s289_s26 = sshll.u32 %s485_s25, 4  ;;  %s290_s26 = int_to_ptr.vmem [resolvable:$true] %s289_s26 }
   0x8   :  { %185 = vmatpush.bf16.msra.mxu1 %v414_v2  ;;  %v412_v5 = vld [vmem:[#allocation2 + $0x68] sm:$0xff]  ;;  %v403_v6 = vld [vmem:[#allocation2 + $0x20] sm:$0xff]  ;;  %v402_v8 = vld [vmem:[#allocation2 + $0x18] sm:$0xff] }
   0x9   :  { %v411_v7 = vld [vmem:[#allocation2 + $0x60] sm:$0xff]  ;;  %v410_v9 = vld [vmem:[#allocation2 + $0x58] sm:$0xff]  ;;  %v401_v10 = vld [vmem:[#allocation2 + $0x10] sm:$0xff] }
   0xa   :  { %v409_v11 = vld [vmem:[#allocation2 + $0x50] sm:$0xff]  ;;  %v400_v12 = vld [vmem:[#allocation2 + $0x8] sm:$0xff]  ;;  %v399_v13 = vld [vmem:[#allocation2] sm:$0xff] }
   0xb   :  { %101 = vmatpush.bf16.msra.mxu0 %v405_v1  ;;  %v31_v14 = vld [vmem:[%s524_s0] sm:$0xf]  ;;  %v408_v15 = vld [vmem:[#allocation2 + $0x48] sm:$0xff]  ;;  %v422_v17 = vld [vmem:[#allocation2 + $0xb8] sm:$0xff] }
   0xc   :  { %186 = vmatpush.bf16.msra.mxu1 %v413_v3  ;;  %v407_v16 = vld [vmem:[#allocation2 + $0x40] sm:$0xff]  ;;  %270 = vmatpush.bf16.msra.mxu2 %v422_v17  ;;  %v421_v18 = vld [vmem:[#allocation2 + $0xb0] sm:$0xff]  ;;  %v420_v19 = vld [vmem:[#allocation2 + $0xa8] sm:$0xff] }
   0xd   :  { %v419_v20 = vld [vmem:[#allocation2 + $0xa0] sm:$0xff]  ;;  %v418_v21 = vld [vmem:[#allocation2 + $0x98] sm:$0xff]  ;;  %v417_v22 = vld [vmem:[#allocation2 + $0x90] sm:$0xff] }
   0xe   :  { %v427_v23 = vld [vmem:[%s526_s2] ss:$0 sm:$0xff]  ;;  %v416_v29 = vld [vmem:[#allocation2 + $0x88] sm:$0xff]  ;;  %v428_v31 = vld [vmem:[%s526_s2 + $0x1] ss:$0 sm:$0xff] }
   0xf   :  { %102 = vmatpush.bf16.msra.mxu0 %v404_v4  ;;  %v415_v30 = vld [vmem:[#allocation2 + $0x80] sm:$0xff] }
  0x10   :  { %187 = vmatpush.bf16.msra.mxu1 %v412_v5  ;;  %271 = vmatpush.bf16.msra.mxu2 %v421_v18  ;;  %v429_v37 = vld [vmem:[%s526_s2 + $0x2] ss:$0 sm:$0xff] }
  0x13   :  { %103 = vmatpush.bf16.msra.mxu0 %v403_v6 }
  0x14   :  { %188 = vmatpush.bf16.msra.mxu1 %v411_v7  ;;  %272 = vmatpush.bf16.msra.mxu2 %v420_v19 }
  0x17   :  { %104 = vmatpush.bf16.msra.mxu0 %v402_v8 }
  0x18   :  { %189 = vmatpush.bf16.msra.mxu1 %v410_v9  ;;  %273 = vmatpush.bf16.msra.mxu2 %v419_v20 }
  0x1b   :  { %105 = vmatpush.bf16.msra.mxu0 %v401_v10 }
  0x1c   :  { %190 = vmatpush.bf16.msra.mxu1 %v409_v11  ;;  %274 = vmatpush.bf16.msra.mxu2 %v418_v21 }
  0x1f   :  { %106 = vmatpush.bf16.msra.mxu0 %v400_v12 }
  0x20   :  { %191 = vmatpush.bf16.msra.mxu1 %v408_v15  ;;  %275 = vmatpush.bf16.msra.mxu2 %v417_v22 }
  0x23   :  { %107 = vmatpush.bf16.msra.mxu0 %v399_v13 }
  0x24   :  { %192 = vmatpush.bf16.msra.mxu1 %v407_v16  ;;  %276 = vmatpush.bf16.msra.mxu2 %v416_v29 }
  0x26   :  { %108 = vmatmul.bf16.vlgmr.msra.gmra.mxu0 %v31_v14 }
  0x28   :  { %277 = vmatpush.bf16.msra.mxu2 %v415_v30 }
  0xa3   :  { %v109_v24 = vpop.f32.mrf.mxu0 }
  0xa4   :  { %v110_v25 = vadd.f32 %v427_v23, %v109_v24 }
  0xa6   :  { %v113_v26 = vmax.f32 %v110_v25, 0.0 }
  0xa8   :  { %v114_v27 = vpack.c.bf16 %v113_v26, %v113_v26 }
  0xaa   :  { %193 = vmatmul.bf16.vlgmr.msra.gmra.mxu1 %v114_v27 }
  0xab   :  { %v111_v28 = vpop.f32.mrf.mxu0 }
 0x127   :  { %v194_v32 = vpop.f32.mrf.mxu1 }
 0x128   :  { %v195_v33 = vadd.f32 %v428_v31, %v194_v32 }
 0x12a   :  { %v198_v34 = vmax.f32 %v195_v33, 0.0 }
 0x12c   :  { %v199_v35 = vpack.c.bf16 %v198_v34, %v198_v34 }
 0x12e   :  { %278 = vmatmul.bf16.vlgmr.msra.gmra.mxu2 %v199_v35 }
 0x12f   :  { %v196_v36 = vpop.f32.mrf.mxu1 }
 0x1b1   :  { %v279_v38 = vpop.f32.mrf.mxu2 }
 0x1b2   :  { %v280_v39 = vadd.f32 %v429_v37, %v279_v38 }
 0x1b4   :  { %283 = vst [vmem:[#allocation5] sm:$0xff] %v280_v39 }
 0x1b5   :  { %294 = dma.vmem_to_hbm [thread:$0]  %s290_s26, 128, %s292_s29, [#allocation4]  }
 0x1b9   :  { %v281_v40 = vpop.f32.mrf.mxu2 }
 0x1ba   :  { %480 = dma.done.wait [#allocation4], 128  }
 0x1bb   :  { %481 = vsyncadd [#allocation4], 4294967168 }
 0x1bc   :  { %299 = vsyncpa [#allocation3], 1 }
 0x1bd   :  { %300 = vsyncpa [#allocation4], 1 }

</bundles_post_ra>
